<compile_context>
chip_gen: v7x
topology: tpu7x:2x2x1
jax: 0.10.0
libtpu: 0.0.40
codegen_flags: <defaults>
</compile_context>

<pallas_src>
import functools

import jax
import jax.numpy as jnp
from jax.experimental import pallas as pl
from jax.experimental.pallas import tpu as pltpu

EPS = 1e-5
VMEM_LIMIT = 32 * 1024 * 1024


def _round_up(n, m):
    return ((n + m - 1) // m) * m


def _bn_affine(bn):
    gamma, beta, mean, var = bn
    s = gamma / jnp.sqrt(var + EPS)
    return s, beta - mean * s


def _row(v):
    return v.astype(jnp.float32).reshape(1, -1)


# --------------------------- row-tiled linear (+BN+ReLU) ---------------------

def _linear_kernel(x_ref, w_ref, s_ref, b_ref, o_ref, *, relu):
    y = jnp.dot(x_ref[...], w_ref[...], preferred_element_type=jnp.float32)
    y = y * s_ref[...] + b_ref[...]
    if relu:
        y = jnp.maximum(y, 0.0)
    o_ref[...] = y


def linear_scale_bias(x, w, scale, bias, relu, tm_max=512):
    """out[N, Co] = act((x @ w) * scale + bias); bf16 matmul, f32 epilogue."""
    N, Ci = x.shape
    Co = w.shape[1]
    tm = min(tm_max, _round_up(N, 8))
    return pl.pallas_call(
        functools.partial(_linear_kernel, relu=relu),
        out_shape=jax.ShapeDtypeStruct((N, Co), jnp.float32),
        grid=(pl.cdiv(N, tm),),
        in_specs=[
            pl.BlockSpec((tm, Ci), lambda i: (i, 0)),
            pl.BlockSpec((Ci, Co), lambda i: (0, 0)),
            pl.BlockSpec((1, Co), lambda i: (0, 0)),
            pl.BlockSpec((1, Co), lambda i: (0, 0)),
        ],
        out_specs=pl.BlockSpec((tm, Co), lambda i: (i, 0)),
        compiler_params=pltpu.CompilerParams(
            dimension_semantics=("parallel",), vmem_limit_bytes=VMEM_LIMIT),
        cost_estimate=pl.CostEstimate(
            flops=2 * N * Ci * Co, transcendentals=0,
            bytes_accessed=N * Ci * 2 + Ci * Co * 2 + N * Co * 4),
    )(x.astype(jnp.bfloat16), w.astype(jnp.bfloat16), _row(scale), _row(bias))


# --------------------------- pairwise distance (kNN metric) ------------------

def _pdist_kernel(xq_ref, xk_ref, o_ref):
    xq = xq_ref[0]                                                 # [TQ, D]
    xk = xk_ref[0]                                                 # [P, D]
    g = jax.lax.dot_general(xq, xk, (((1,), (1,)), ((), ())),
                            preferred_element_type=jnp.float32)    # xq @ xk.T
    sqq = jnp.sum(xq * xq, axis=-1, keepdims=True)                 # [TQ, 1]
    sqk = jnp.sum(xk * xk, axis=-1)[None, :]                       # [1, P]
    o_ref[0] = 2.0 * g - sqq - sqk                                 # -|xi-xj|^2


def pairwise_dist(x):
    """x: [B, P, D] -> negative squared pairwise distances [B, P, P]."""
    B, P, D = x.shape
    tq = min(128, _round_up(P, 8))
    return pl.pallas_call(
        _pdist_kernel,
        out_shape=jax.ShapeDtypeStruct((B, P, P), jnp.float32),
        grid=(B, pl.cdiv(P, tq)),
        in_specs=[pl.BlockSpec((1, tq, D), lambda b, q: (b, q, 0)),
                  pl.BlockSpec((1, P, D), lambda b, q: (b, 0, 0))],
        out_specs=pl.BlockSpec((1, tq, P), lambda b, q: (b, q, 0)),
        compiler_params=pltpu.CompilerParams(
            dimension_semantics=("parallel", "parallel"),
            vmem_limit_bytes=VMEM_LIMIT),
    )(x, x)


# --------------------------- fused EdgeConv block -----------------------------

def _edgeconv_kernel(*refs, k, has_sc):
    if has_sc:
        (diff_ref, ctr_ref, m_ref, w1c, w1n, s1, b1, w2, s2, b2,
         w3, s3, b3, wsc, ssc, bsc, o_ref) = refs
    else:
        (diff_ref, ctr_ref, m_ref, w1c, w1n, s1, b1, w2, s2, b2,
         w3, s3, b3, o_ref) = refs
        wsc = ssc = bsc = None
    ctr_f32 = ctr_ref[...]                      # f32 center features (shortcut path)
    ctr = ctr_f32.astype(jnp.bfloat16)
    w1nv, w2v, w3v = w1n[...], w2[...], w3[...]
    s1v, b1v = s1[...], b1[...]
    s2v, b2v = s2[...], b2[...]
    s3v, b3v = s3[...], b3[...]
    # center half of conv1 computed once per point (weight split saves k-fold work)
    zc = jnp.dot(ctr, w1c[...], preferred_element_type=jnp.float32)
    acc = None
    for j in range(k):                          # unrolled; intermediates stay in VMEM/vregs
        zn = jnp.dot(diff_ref[j], w1nv, preferred_element_type=jnp.float32)
        h = jnp.maximum((zc + zn) * s1v + b1v, 0.0)
        h = jnp.maximum(jnp.dot(h.astype(jnp.bfloat16), w2v,
                                preferred_element_type=jnp.float32) * s2v + b2v, 0.0)
        h = jnp.maximum(jnp.dot(h.astype(jnp.bfloat16), w3v,
                                preferred_element_type=jnp.float32) * s3v + b3v, 0.0)
        acc = h if acc is None else acc + h
    if has_sc:
        sc = jnp.dot(ctr, wsc[...], preferred_element_type=jnp.float32) * ssc[...] + bsc[...]
    else:
        sc = ctr_f32
    o_ref[...] = jnp.maximum(sc + acc * (1.0 / k), 0.0) * m_ref[...]


def edge_conv_fused(diff, ctr, msk, ec):
    """diff: [K, N, C] bf16 (neighbor-center), ctr: [N, C] f32, msk: [N, 1] f32."""
    K, N, C = diff.shape
    (w1, bn1), (w2, bn2), (w3, bn3) = ec['convs']
    s1, b1 = _bn_affine(bn1)
    s2, b2 = _bn_affine(bn2)
    s3, b3 = _bn_affine(bn3)
    c1, c2, c3 = w1.shape[1], w2.shape[1], w3.shape[1]
    has_sc = ec['sc'] is not None
    args = [diff, ctr.astype(jnp.float32), msk.astype(jnp.float32),
            w1[:C].astype(jnp.bfloat16), w1[C:].astype(jnp.bfloat16), _row(s1), _row(b1),
            w2.astype(jnp.bfloat16), _row(s2), _row(b2),
            w3.astype(jnp.bfloat16), _row(s3), _row(b3)]
    if has_sc:
        wsc, bnsc = ec['sc']
        ssc, bsc = _bn_affine(bnsc)
        args += [wsc.astype(jnp.bfloat16), _row(ssc), _row(bsc)]

    tm = min(256, _round_up(N, 8))
    in_specs = ([pl.BlockSpec((K, tm, C), lambda i: (0, i, 0)),
                 pl.BlockSpec((tm, C), lambda i: (i, 0)),
                 pl.BlockSpec((tm, 1), lambda i: (i, 0))]
                + [pl.BlockSpec(a.shape, lambda i: (0, 0)) for a in args[3:]])
    flops = N * (K * 2 * (C * c1 + c1 * c2 + c2 * c3) + 2 * C * c1
                 + (2 * C * c3 if has_sc else 0))
    bytes_acc = K * N * C * 2 + N * C * 4 + N * 4 + N * c3 * 4
    return pl.pallas_call(
        functools.partial(_edgeconv_kernel, k=K, has_sc=has_sc),
        out_shape=jax.ShapeDtypeStruct((N, c3), jnp.float32),
        grid=(pl.cdiv(N, tm),),
        in_specs=in_specs,
        out_specs=pl.BlockSpec((tm, c3), lambda i: (i, 0)),
        compiler_params=pltpu.CompilerParams(
            dimension_semantics=("parallel",), vmem_limit_bytes=VMEM_LIMIT),
        cost_estimate=pl.CostEstimate(flops=flops, transcendentals=0,
                                      bytes_accessed=bytes_acc),
    )(*args)


def edge_conv_block(pts, fts, mask, ec):
    """pts: [B,P,D] coord-shifted points, fts: [B,P,C], mask: [B,P,1]."""
    B, P, C = fts.shape
    k = ec['k']
    dist = pairwise_dist(pts)                                      # Pallas matmul
    # TODO(synk): top-k neighbor selection and the index gather have no clean
    # Pallas TPU primitive; done in plain JAX (lax.top_k + advanced indexing).
    idx = jax.lax.top_k(dist, k + 1)[1][..., 1:]                   # [B, P, k]
    idxk = jnp.moveaxis(idx, -1, 0)                                # [k, B, P]
    nbr = fts[jnp.arange(B)[None, :, None], idxk]                  # [k, B, P, C]
    diff = (nbr - fts[None]).astype(jnp.bfloat16).reshape(k, B * P, C)
    out = edge_conv_fused(diff, fts.reshape(B * P, C), mask.reshape(B * P, 1), ec)
    return out.reshape(B, P, -1)                                   # already masked


# ---------------- fused fusion conv + BN + ReLU + mask + sum-pool -------------

def _fusion_pool_kernel(*refs, n_in):
    xs = refs[:n_in]
    m_ref = refs[n_in]
    ws = refs[n_in + 1:2 * n_in + 1]
    s_ref, b_ref, o_ref = refs[2 * n_in + 1:]

    @pl.when(pl.program_id(1) == 0)
    def _():
        o_ref[...] = jnp.zeros_like(o_ref)

    # concat(outputs) @ W expressed as a split matmul (no in-kernel concat)
    y = jnp.dot(xs[0][0], ws[0][...], preferred_element_type=jnp.float32)
    for xr, wr in zip(xs[1:], ws[1:]):
        y += jnp.dot(xr[0], wr[...], preferred_element_type=jnp.float32)
    y = jnp.maximum(y * s_ref[...] + b_ref[...], 0.0) * m_ref[0]
    o_ref[0] += jnp.sum(y, axis=0, keepdims=True)


def fusion_pool(outputs, mask, w, scale, bias, tp_max=256):
    """outputs: list of [B, P, Ci] f32; returns masked point-sum of the fusion
    block output: sum_p relu(BN(cat(outputs) @ w)) * mask  -> [B, 1, Co]."""
    B, P, _ = outputs[0].shape
    Co = w.shape[1]
    splits, off = [], 0
    for o in outputs:
        c = o.shape[-1]
        splits.append(w[off:off + c].astype(jnp.bfloat16))
        off += c
    n_in = len(outputs)
    tp = P if P <= tp_max else tp_max
    if P % tp:
        tp = P                                   # avoid padded reduction blocks
    args = ([o.astype(jnp.bfloat16) for o in outputs]
            + [mask.astype(jnp.float32)] + splits
            + [_row(scale), _row(bias)])
    in_specs = ([pl.BlockSpec((1, tp, o.shape[-1]), lambda b, p: (b, p, 0))
                 for o in outputs]
                + [pl.BlockSpec((1, tp, 1), lambda b, p: (b, p, 0))]
                + [pl.BlockSpec(s.shape, lambda b, p: (0, 0)) for s in splits]
                + [pl.BlockSpec((1, Co), lambda b, p: (0, 0))] * 2)
    ci_tot = sum(o.shape[-1] for o in outputs)
    return pl.pallas_call(
        functools.partial(_fusion_pool_kernel, n_in=n_in),
        out_shape=jax.ShapeDtypeStruct((B, 1, Co), jnp.float32),
        grid=(B, pl.cdiv(P, tp)),
        in_specs=in_specs,
        out_specs=pl.BlockSpec((1, 1, Co), lambda b, p: (b, 0, 0)),
        compiler_params=pltpu.CompilerParams(
            dimension_semantics=("parallel", "arbitrary"),
            vmem_limit_bytes=VMEM_LIMIT),
        cost_estimate=pl.CostEstimate(
            flops=2 * B * P * ci_tot * Co, transcendentals=0,
            bytes_accessed=B * P * ci_tot * 2 + B * P * 4
            + ci_tot * Co * 2 + B * Co * 4),
    )(*args)


# --------------------------- fused 4-layer FC head ----------------------------

def _fc_head_kernel(x_ref, g_ref, w0, b0, w1a, w1b, b1, w2, b2, w3, b3, o_ref):
    h = jnp.maximum(jnp.dot(x_ref[...], w0[...],
                            preferred_element_type=jnp.float32) + b0[...], 0.0)
    # concat(x, global_sum) @ W1 expressed as a split matmul (no in-kernel concat)
    h = jnp.maximum(jnp.dot(h, w1a[...], preferred_element_type=jnp.float32)
                    + jnp.dot(g_ref[...], w1b[...], preferred_element_type=jnp.float32)
                    + b1[...], 0.0)
    h = jnp.maximum(jnp.dot(h, w2[...],
                            preferred_element_type=jnp.float32) + b2[...], 0.0)
    o_ref[...] = jnp.dot(h, w3[...], preferred_element_type=jnp.float32) + b3[...]


def fc_head(x, gsum, fc_params):
    (w0, b0), (w1, b1), (w2, b2), (w3, b3) = fc_params
    d0 = w0.shape[1]                                 # width of fc0 output (128)
    w1a, w1b = w1[:d0], w1[d0:]
    args = [x.astype(jnp.float32), gsum.astype(jnp.float32),
            w0, _row(b0), w1a, w1b, _row(b1), w2, _row(b2), w3, _row(b3)]
    B = x.shape[0]
    nc = w3.shape[1]
    return pl.pallas_call(
        _fc_head_kernel,
        out_shape=jax.ShapeDtypeStruct((B, nc), jnp.float32),
        grid=(1,),
        in_specs=[pl.BlockSpec(a.shape, lambda i, nd=a.ndim: (0,) * nd) for a in args],
        out_specs=pl.BlockSpec((B, nc), lambda i: (0, 0)),
        compiler_params=pltpu.CompilerParams(
            dimension_semantics=("arbitrary",), vmem_limit_bytes=VMEM_LIMIT),
    )(*args)


# --------------------------- model (glue + kernels) ---------------------------

def particle_net(points, features, global_bn, mask, params):
    # points [B,P,Dpt], features [B,P,32], mask [B,P,1], global_bn [B,G,Lg]
    points = points * mask
    features = features * mask
    coord_shift = (mask == 0).astype(jnp.float32) * 1e9
    counts = jnp.maximum(jnp.sum(mask, axis=1), 1.0)               # [B,1]

    s, b = _bn_affine(params['bn_fts'])
    fts = (features * s + b) * mask

    outputs = []
    for i, ec in enumerate(params['edge_convs']):
        pts = (points if i == 0 else fts) + coord_shift
        fts = edge_conv_block(pts, fts, mask, ec)                  # mask folded in kernel
        outputs.append(fts)

    # fusion Conv1d(96,128)+BN+ReLU, mask and masked sum-pool fused in one kernel
    s, b = _bn_affine(params['fusion_bn'])
    pooled = fusion_pool(outputs, mask, params['fusion_w'], s, b)[:, 0, :]  # [B,128]
    x = pooled / counts
    gsum = jnp.sum(global_bn, axis=-1)                             # [B,G]
    return fc_head(x, gsum, params['fc'])                          # no softmax (for_inference=False)


def particlenet_tagger(global_features, constituents_points, constituents_features,
                       constituents_mask, params):
    """Inputs follow the PyTorch layout:
       global_features [B, G, Lg], constituents_points [B, Dpt, P],
       constituents_features [B, Cin, P], constituents_mask [B, 1, P]."""
    pts = jnp.transpose(constituents_points, (0, 2, 1))            # [B, P, Dpt]
    fts = jnp.transpose(constituents_features, (0, 2, 1))          # [B, P, Cin]
    msk = jnp.transpose(constituents_mask, (0, 2, 1))              # [B, P, 1]

    # FeatureConv: BN(Cin) -> Conv1d(Cin,32,bias=False) -> BN(32) -> ReLU,
    # both BNs folded into the matmul kernel (weight scaling + scale/bias).
    x = fts * msk
    fc = params['feat_conv']
    s0, b0 = _bn_affine(fc['bn0'])
    s1, b1 = _bn_affine(fc['bn1'])
    w_eff = fc['w'] * s0[:, None]
    bias = (b0 @ fc['w']) * s1 + b1
    B, P, Cin = x.shape
    feat32 = linear_scale_bias(x.reshape(B * P, Cin), w_eff, s1, bias,
                               relu=True).reshape(B, P, -1)
    feat32 = feat32 * msk

    sg, bg = _bn_affine(params['global_bn'])
    global_bn = global_features * sg[None, :, None] + bg[None, :, None]

    return particle_net(pts, feat32, global_bn, msk, params)


# --------------------------- deterministic init --------------------------------

def init_params(key, cin, g, num_classes):
    keys = iter(jax.random.split(key, 128))

    def nk():
        return next(keys)

    def bn(c):
        return (1.0 + 0.05 * jax.random.normal(nk(), (c,), jnp.float32),         # gamma
                0.05 * jax.random.normal(nk(), (c,), jnp.float32),                # beta
                0.05 * jax.random.normal(nk(), (c,), jnp.float32),                # running_mean
                1.0 + 0.1 * jnp.abs(jax.random.normal(nk(), (c,), jnp.float32)))  # running_var

    def w(ci, co):
        return jax.random.normal(nk(), (ci, co), jnp.float32) / jnp.sqrt(float(ci))

    def bvec(c):
        return 0.05 * jax.random.normal(nk(), (c,), jnp.float32)

    # conv_params = [(7,(32,32,32)), (7,(64,64,64))], input_dims=32, fc_params=[(128,0.1)]
    ec1 = {'k': 7,
           'convs': [(w(64, 32), bn(32)), (w(32, 32), bn(32)), (w(32, 32), bn(32))],
           'sc': None}                                             # in_feat == out_feats[-1]
    ec2 = {'k': 7,
           'convs': [(w(64, 64), bn(64)), (w(64, 64), bn(64)), (w(64, 64), bn(64))],
           'sc': (w(32, 64), bn(64))}
    return {
        'feat_conv': {'bn0': bn(cin), 'w': w(cin, 32), 'bn1': bn(32)},
        'global_bn': bn(g),
        'bn_fts': bn(32),
        'edge_convs': [ec1, ec2],
        'fusion_w': w(96, 128), 'fusion_bn': bn(128),
        'fc': [(w(128, 128), bvec(128)),
               (w(128 + g, 128 + g), bvec(128 + g)),
               (w(128 + g, 128), bvec(128)),
               (w(128, num_classes), bvec(num_classes))],
    }


# --------------------------- main ----------------------------------------------

if __name__ == "__main__":
    B, P = 2, 16          # batch, num points
    Cin, Dpt = 4, 2       # constituents feature dims, point-coordinate dims
    G, Lg = 3, 2          # global feature channels, global feature length
    NUM_CLASSES = 5

    root = jax.random.PRNGKey(0)
    kp, k1, k2, k3 = jax.random.split(root, 4)
    params = init_params(kp, Cin, G, NUM_CLASSES)

    constituents_points = jax.random.normal(k1, (B, Dpt, P), jnp.float32)
    constituents_features = jax.random.normal(k2, (B, Cin, P), jnp.float32)
    global_features = jax.random.normal(k3, (B, G, Lg), jnp.float32)
    # mask: batch 0 has 16 valid points, batch 1 has 12 (>= k+1 = 8 each)
    valid = jnp.array([16, 12], jnp.int32)
    constituents_mask = (jnp.arange(P)[None, None, :] < valid[:, None, None]).astype(jnp.float32)

    out = particlenet_tagger(global_features, constituents_points,
                             constituents_features, constituents_mask, params)
    out = jax.block_until_ready(out)

    assert out.shape == (B, NUM_CLASSES), out.shape
    assert bool(jnp.all(jnp.isfinite(out)))
    print("KERNEL_OK")
</pallas_src>

<mosaic_0001>
module attributes {stable_mosaic.version = 11 : i64} {
  func.func @_linear_kernel(%arg0: i32, %arg1: memref<32x4xbf16, #tpu.memory_space<vmem>>, %arg2: memref<4x32xbf16, #tpu.memory_space<vmem>>, %arg3: memref<1x32xf32, #tpu.memory_space<vmem>>, %arg4: memref<1x32xf32, #tpu.memory_space<vmem>>, %arg5: memref<32x32xf32, #tpu.memory_space<vmem>>) attributes {dimension_semantics = [#tpu.dimension_semantics<parallel>], iteration_bounds = array<i64: 1>, scalar_prefetch = 0 : i64, scratch_operands = 0 : i64, tpu.core_type = #tpu.core_type<tc>, window_params = [{transform_indices = @transform_0, window_bounds = array<i64: 32, 4>}, {pipeline_mode = #tpu.pipeline_mode<synchronous>, transform_indices = @transform_1, window_bounds = array<i64: 4, 32>}, {pipeline_mode = #tpu.pipeline_mode<synchronous>, transform_indices = @transform_2, window_bounds = array<i64: 1, 32>}, {pipeline_mode = #tpu.pipeline_mode<synchronous>, transform_indices = @transform_3, window_bounds = array<i64: 1, 32>}, {transform_indices = @transform_4, window_bounds = array<i64: 32, 32>}]} {
    %c0 = arith.constant 0 : index
    %c0_0 = arith.constant 0 : index
    %0 = vector.load %arg1[%c0, %c0_0] : memref<32x4xbf16, #tpu.memory_space<vmem>>, vector<32x4xbf16>
    %c0_1 = arith.constant 0 : index
    %c0_2 = arith.constant 0 : index
    %1 = vector.load %arg2[%c0_1, %c0_2] : memref<4x32xbf16, #tpu.memory_space<vmem>>, vector<4x32xbf16>
    %cst = arith.constant dense<0.000000e+00> : vector<32x32xf32>
    %2 = tpu.matmul %0, %1, %cst {dimension_numbers = #tpu.dot_dimension_numbers<[1], [0], [0], [1], [0, 0, 1, 1], [], []>} : vector<32x4xbf16>, vector<4x32xbf16>, vector<32x32xf32> -> vector<32x32xf32>
    %c0_3 = arith.constant 0 : index
    %c0_4 = arith.constant 0 : index
    %3 = vector.load %arg3[%c0_3, %c0_4] : memref<1x32xf32, #tpu.memory_space<vmem>>, vector<1x32xf32>
    %4 = vector.broadcast %3 : vector<1x32xf32> to vector<32x32xf32>
    %5 = arith.mulf %2, %4 : vector<32x32xf32>
    %c0_5 = arith.constant 0 : index
    %c0_6 = arith.constant 0 : index
    %6 = vector.load %arg4[%c0_5, %c0_6] : memref<1x32xf32, #tpu.memory_space<vmem>>, vector<1x32xf32>
    %7 = vector.broadcast %6 : vector<1x32xf32> to vector<32x32xf32>
    %8 = arith.addf %5, %7 : vector<32x32xf32>
    %cst_7 = arith.constant 0.000000e+00 : f32
    %9 = vector.broadcast %cst_7 : f32 to vector<32x32xf32>
    %10 = arith.maximumf %8, %9 : vector<32x32xf32>
    %c0_8 = arith.constant 0 : index
    %c0_9 = arith.constant 0 : index
    %11 = vector.load %arg5[%c0_8, %c0_9] : memref<32x32xf32, #tpu.memory_space<vmem>>, vector<32x32xf32>
    tpu.vector_store %arg5[%c0_8, %c0_9], %10 {strides = array<i32>} : memref<32x32xf32, #tpu.memory_space<vmem>>, vector<32x32xf32>,
    return
  }
  func.func @transform_0(%arg0: i32) -> (i32, i32) {
    %c0_i32 = arith.constant 0 : i32
    %c0_i32_0 = arith.constant 0 : i32
    return %arg0, %c0_i32 : i32, i32
  }
  func.func @transform_1(%arg0: i32) -> (i32, i32) {
    %c0_i32 = arith.constant 0 : i32
    %c0_i32_0 = arith.constant 0 : i32
    %c0_i32_1 = arith.constant 0 : i32
    return %c0_i32, %c0_i32_0 : i32, i32
  }
  func.func @transform_2(%arg0: i32) -> (i32, i32) {
    %c0_i32 = arith.constant 0 : i32
    %c0_i32_0 = arith.constant 0 : i32
    %c0_i32_1 = arith.constant 0 : i32
    return %c0_i32, %c0_i32_0 : i32, i32
  }
  func.func @transform_3(%arg0: i32) -> (i32, i32) {
    %c0_i32 = arith.constant 0 : i32
    %c0_i32_0 = arith.constant 0 : i32
    %c0_i32_1 = arith.constant 0 : i32
    return %c0_i32, %c0_i32_0 : i32, i32
  }
  func.func @transform_4(%arg0: i32) -> (i32, i32) {
    %c0_i32 = arith.constant 0 : i32
    %c0_i32_0 = arith.constant 0 : i32
    return %arg0, %c0_i32 : i32, i32
  }
}

</mosaic_0001>

<bundles_post_ra>
// kernel: tpu_custom_call.1
= control target key start
LH: loop header
LB: loop body
LE: loop exit
PB: predicated region body
PF: predicated region fallthrough
CT: control target
= control target key end

     0   :  { %vm41_vm0 = vcmask 1041408   ;;  %vm34_vm1 = vcmask 31744   ;;  %s241_s0 = inlined_call_operand.vmem [shape: bf16[32,4], index: 0, kind: input, shape index: {}]   ;;  %s242_s1 = inlined_call_operand.vmem [shape: bf16[4,32], index: 1, kind: input, shape index: {}]   ;;  %s243_s2 = inlined_call_operand.vmem [shape: f32[1,32], index: 2, kind: input, shape index: {}]   ;;  %s244_s3 = inlined_call_operand.vmem [shape: f32[1,32], index: 3, kind: input, shape index: {}]   ;;  %s245_s4 = inlined_call_operand.hbm [shape: f32[32,32], index: 4, kind: output, shape index: {}]  }
   0x1   :  { %v23_v0 = vld [vmem:[%s242_s1] sm:$0x3]  ;;  %v161_v3 = vld [vmem:[%s241_s0 + $0x8] sm:$0xff]  }
   0x2   :  { %v160_v1 = vld [vmem:[%s241_s0] sm:$0xff]   ;;  %156 = vmatprep.subr.msk.bf16.mxu0 %vm41_vm0, %v23_v0  ;;  %v43_v2 = vsel %vm41_vm0, %v23_v0, 0 }
   0x3   :  { %151 = vmatpush3.bf16.msra.mxu0 %v43_v2  ;;  %152 = vmatprep.mubr.msk.bf16.mxu0 %vm34_vm1, %v160_v1 }
   0x4   :  { %9 = vsyncpa [#allocation3], 0  ;;  %v145_v4 = vld [vmem:[%s243_s2] ss:$0 sm:$0xff]  ;;  %vm120_vm2 = vcmask 261120   ;;  %s186_s0 = smov [#allocation2]  }
   0x5   :  { %v146_v6 = vld [vmem:[%s244_s3] ss:$0 sm:$0xff]  ;;  %s130_s24 = sshll.u32 %s186_s0, 4  ;;  %s131_s24 = int_to_ptr.vmem [resolvable:$true] %s130_s24 }
   0x6   :  { %153 = vmatmul.mubr.msk.bf16.vlgmr.msra.gmra.mrb[0].mxu0 %vm34_vm1, %v161_v3  ;;  %s162_s2 = scalar_lea.vmem %s131_s24, 512  ;;  %p167_p1 = scmp.lt.s32.totalorder %s131_s24, %s131_s24 }
   0x7   :  { %p163_p0 = scmp.ne.s32.totalorder %s131_s24, %s162_s2  ;;  %p168_p2 = scmp.lt.s32.totalorder %s162_s2, %s162_s2 }
   0x9   :  { %p169_p3 = por %p168_p2, %p167_p1 }
   0xb   :  { %p170_p4 = pnand %p169_p3, %p163_p0 }
  0xd9   :  { %v154_v5 = vpop.f32.mrb[0].mxu0 }
  0xda   :  { %v103_v7 = vmul.f32 %v154_v5, %v145_v4  ;;  %v79_v8 = vpop.f32.mrb[1].mxu0 }
  0xdb   :  { %v101_v9 = vmul.f32 %v145_v4, %v79_v8  ;;  %v155_v10 = vpop.f32.mrb[2].mxu0 }
  0xdc   :  { %v114_v11 = vadd.f32 %v146_v6, %v103_v7  ;;  %v104_v12 = vmul.f32 %v155_v10, %v145_v4  ;;  %v82_v13 = vpop.f32.mrb[3].mxu0 }
  0xdd   :  { %v112_v14 = vadd.f32 %v146_v6, %v101_v9  ;;  %v102_v15 = vmul.f32 %v145_v4, %v82_v13 }
  0xde   :  { %v118_v16 = vmax.f32 %v114_v11, 0.0  ;;  %v115_v17 = vadd.f32 %v146_v6, %v104_v12 }
  0xdf   :  { %v116_v18 = vmax.f32 %v112_v14, 0.0  ;;  %v113_v19 = vadd.f32 %v146_v6, %v102_v15 }
  0xe0   :  { %123 = vst.msk [vmem:[#allocation2 + $0x10] sm:$0xff] %vm120_vm2, %v118_v16  ;;  %v119_v20 = vmax.f32 %v115_v17, 0.0 }
  0xe1   :  { %121 = vst.msk [vmem:[#allocation2] sm:$0xff] %vm120_vm2, %v116_v18  ;;  %v117_v21 = vmax.f32 %v113_v19, 0.0 }
  0xe2   :  { %124 = vst.msk [vmem:[#allocation2 + $0x18] sm:$0xff] %vm120_vm2, %v119_v20 }
  0xe3   :  { %122 = vst.msk [vmem:[#allocation2 + $0x8] sm:$0xff] %vm120_vm2, %v117_v21 }
  0xe4   :  { %173 = shalt.err (!%p170_p4)
}
  0xe5   :  { %s174_s26 = scalar_lea.hbm %s245_s4, 512 }
  0xe6   :  { %p175_p5 = scmp.ne.s32.totalorder %s245_s4, %s174_s26  ;;  %p178_p6 = scmp.lt.u32.totalorder %s174_s26, %s245_s4 }
  0xe8   :  { %p180_p7 = pnand %p178_p6, %p175_p5 }
  0xea   :  { %183 = shalt.err (!%p180_p7)
}
  0xeb   :  { %s187_s5 = smov 128   ;;  %s188_s6 = smov 8  }
  0xec   :  { %136 = dma.vmem_to_hbm [thread:$0]  %s131_s24, 512, %s245_s4, [#allocation3], %s187_s5, %s187_s5, %s188_s6  }
  0xed   :  { %184 = dma.done.wait [#allocation3], 512  }
  0xee   :  { %185 = vsyncadd [#allocation3], 4294966784 }
  0xef   :  { %140 = vsyncpa [#allocation3], 1 }

</bundles_post_ra>
